<compile_context>
chip_gen: v6e
topology: v6e:2x2x1
jax: 0.10.0
libtpu: 0.0.40
codegen_flags: <defaults>
</compile_context>

<pallas_src>
import functools

import jax
import jax.numpy as jnp
from jax.experimental import pallas as pl
from jax.experimental.pallas import tpu as pltpu


def _round_up(x, m):
    return (x + m - 1) // m * m


def _silu(v):
    # Exact SiLU: x * sigmoid(x).  jax.nn.sigmoid lowers to the EUP and is
    # overflow-safe for very negative inputs (unlike 1/(1+exp(-x)) with an
    # approximate reciprocal, which compounded error and could hit inf).
    return v * jax.nn.sigmoid(v)


# ----------------------------- kernels --------------------------------------
def mlp_resident_kernel(x_ref, w_in_ref, b_in_ref, w_h_ref, b_h_ref,
                        w_out_ref, b_out_ref, y_ref, *, n_hidden):
    """All weights VMEM-resident (constant index_maps); one batch tile/step."""
    cdt = w_in_ref.dtype  # matmul dtype (bf16): MXU-native on v5e/v6e/v7x
    h = jnp.dot(x_ref[...].astype(cdt), w_in_ref[...],
                preferred_element_type=jnp.float32) + b_in_ref[...]
    h = _silu(h)
    for i in range(n_hidden):  # static unroll; nLayers is compile-time
        h = jnp.dot(h.astype(cdt), w_h_ref[i],
                    preferred_element_type=jnp.float32) + b_h_ref[i]
        h = _silu(h)
    y = jnp.dot(h.astype(cdt), w_out_ref[...],
                preferred_element_type=jnp.float32) + b_out_ref[...]
    y_ref[...] = y.astype(y_ref.dtype)


def mlp_stream_kernel(x_ref, w_in_ref, b_in_ref, w_h_ref, b_h_ref,
                      w_out_ref, b_out_ref, y_ref, h_ref):
    """Hidden-layer weights streamed one layer at a time (huge nets / v7x).

    grid = (batch_tiles, nLayers + 1); layer axis is innermost / "arbitrary".
    Only one (nNodes, nNodes) hidden weight block is live (double-buffered by
    the pipeline); activations are carried across layer steps in h_ref.
    """
    cdt = w_in_ref.dtype
    l = pl.program_id(1)
    last = pl.num_programs(1) - 1

    @pl.when(l == 0)
    def _():
        h = jnp.dot(x_ref[...].astype(cdt), w_in_ref[...],
                    preferred_element_type=jnp.float32) + b_in_ref[...]
        h_ref[...] = _silu(h)

    @pl.when(jnp.logical_and(l > 0, l < last))
    def _():
        h = jnp.dot(h_ref[...].astype(cdt), w_h_ref[0],
                    preferred_element_type=jnp.float32) + b_h_ref[0]
        h_ref[...] = _silu(h)

    @pl.when(l == last)
    def _():
        y = jnp.dot(h_ref[...].astype(cdt), w_out_ref[...],
                    preferred_element_type=jnp.float32) + b_out_ref[...]
        y_ref[...] = y.astype(y_ref.dtype)


# ----------------------------- wrapper ---------------------------------------
def _vmem_capacity_bytes():
    try:
        return int(pltpu.get_tpu_info().vmem_capacity_bytes)
    except Exception:
        return 64 * 1024 * 1024  # conservative fallback (v7x per-core VMEM)


@functools.partial(jax.jit, static_argnames=("block_b", "stream_hidden"))
def ann_forward(x, w_in, b_in, w_h, b_h, w_out, b_out, *, block_b=1024,
                stream_hidden=None):
    B, n_in = x.shape
    n_nodes = w_in.shape[1]
    n_out = w_out.shape[1]
    n_hidden = w_h.shape[0]

    if n_hidden == 0:  # degenerate nLayers == 1: dummy hidden stack, unused
        w_h = jnp.zeros((1, n_nodes, n_nodes), w_in.dtype)
        b_h = jnp.zeros((1, 1, n_nodes), jnp.float32)

    nbytes = lambda a: a.size * a.dtype.itemsize

    # ---- batch tiling: balanced tiles, multiples of 8 sublanes --------------
    n_tiles = max(-(-B // block_b), 1)
    if B >= 512:
        n_tiles = max(n_tiles, 2)  # let the "parallel" axis shard on v7x
    tb = _round_up(-(-B // n_tiles), 8)
    tb128 = _round_up(tb, 128)
    if tb >= 128 and (tb128 * n_tiles - B) * 16 <= B:
        tb = tb128  # MXU M-tile alignment when padding stays < ~6%
    b_pad = _round_up(B, tb)
    x_p = jnp.pad(x, ((0, b_pad - B), (0, 0))) if b_pad != B else x
    n_tiles = b_pad // tb

    # ---- resident vs streamed hidden weights --------------------------------
    vmem_cap = _vmem_capacity_bytes()
    w_res = sum(nbytes(a) for a in (w_in, b_in, w_h, b_h, w_out, b_out))
    streamed = 2 * tb * (n_in * x.dtype.itemsize + n_out * 4)  # 2x-buffered x/y
    act = 4 * tb * n_nodes * 4                                 # f32 temporaries
    if stream_hidden is None:
        stream_hidden = (n_hidden >= 2
                         and w_res + streamed + act > int(0.7 * vmem_cap))

    if not stream_hidden:
        kernel = functools.partial(mlp_resident_kernel, n_hidden=n_hidden)
        const2 = lambda i: (0, 0)
        const3 = lambda i: (0, 0, 0)
        in_specs = [
            pl.BlockSpec((tb, n_in), lambda i: (i, 0)),  # x: tiled over batch
            pl.BlockSpec(w_in.shape, const2),            # weights/biases stay
            pl.BlockSpec(b_in.shape, const2),            # VMEM-resident across
            pl.BlockSpec(w_h.shape, const3),             # all grid steps
            pl.BlockSpec(b_h.shape, const3),
            pl.BlockSpec(w_out.shape, const2),
            pl.BlockSpec(b_out.shape, const2),
        ]
        out_specs = pl.BlockSpec((tb, n_out), lambda i: (i, 0))
        grid = (n_tiles,)
        scratch_shapes = ()
        dims = ("parallel",)
        vmem_want = 2 * (w_res + streamed + act)
        w_bytes = w_res
    else:
        kernel = mlp_stream_kernel
        layer_steps = n_hidden + 2  # in-layer + hidden layers + out-layer
        h_idx = lambda i, l: (jnp.clip(l - 1, 0, n_hidden - 1), 0, 0)
        in_specs = [
            pl.BlockSpec((tb, n_in), lambda i, l: (i, 0)),
            pl.BlockSpec(w_in.shape, lambda i, l: (0, 0)),
            pl.BlockSpec(b_in.shape, lambda i, l: (0, 0)),
            pl.BlockSpec((1,) + w_h.shape[1:], h_idx),  # one layer at a time
            pl.BlockSpec((1,) + b_h.shape[1:], h_idx),
            pl.BlockSpec(w_out.shape, lambda i, l: (0, 0)),
            pl.BlockSpec(b_out.shape, lambda i, l: (0, 0)),
        ]
        out_specs = pl.BlockSpec((tb, n_out), lambda i, l: (i, 0))
        grid = (n_tiles, layer_steps)
        scratch_shapes = (pltpu.VMEM((tb, n_nodes), jnp.float32),)
        dims = ("parallel", "arbitrary")
        per_layer = (nbytes(w_h) + nbytes(b_h)) // max(n_hidden, 1)
        vmem_want = 2 * (nbytes(w_in) + nbytes(b_in) + nbytes(w_out)
                         + nbytes(b_out) + 2 * per_layer + streamed + act
                         + tb * n_nodes * 4)
        # streamed hidden weights are re-read from HBM once per batch tile
        w_bytes = (nbytes(w_in) + nbytes(b_in) + nbytes(w_out) + nbytes(b_out)
                   + n_tiles * (nbytes(w_h) + nbytes(b_h)))

    # ---- generation-aware VMEM budget (128 MiB on v5e/v6e, 64 MiB on v7x) ---
    vmem_limit = int(min(max(vmem_want, 32 * 1024 * 1024),
                         int(0.85 * vmem_cap)))

    # ---- advisory cost estimate ---------------------------------------------
    flops = 2 * b_pad * (n_in * n_nodes + n_hidden * n_nodes * n_nodes
                         + n_nodes * n_out)
    transcendentals = b_pad * n_nodes * (n_hidden + 1)  # one sigmoid / hidden
    bytes_accessed = nbytes(x_p) + w_bytes + b_pad * n_out * 4
    cost = pl.CostEstimate(flops=flops, transcendentals=transcendentals,
                           bytes_accessed=bytes_accessed)

    y_p = pl.pallas_call(
        kernel,
        out_shape=jax.ShapeDtypeStruct((b_pad, n_out), jnp.float32),
        grid=grid,
        in_specs=in_specs,
        out_specs=out_specs,
        scratch_shapes=scratch_shapes,
        cost_estimate=cost,
        compiler_params=pltpu.CompilerParams(
            dimension_semantics=dims,
            vmem_limit_bytes=vmem_limit),
    )(x_p, w_in, b_in, w_h, b_h, w_out, b_out)

    return y_p[:B] if b_pad != B else y_p


# ----------------------------- params ----------------------------------------
def init_params(key, n_in, n_out, n_nodes, n_layers):
    """PyTorch-Linear-style init (uniform +/- 1/sqrt(fan_in)); weights are
    returned pre-transposed as (in_features, out_features), f32."""
    ks = jax.random.split(key, 2 * (n_layers + 1))

    def linear(kw, kb, fan_in, fan_out):
        bound = 1.0 / jnp.sqrt(fan_in)
        w = jax.random.uniform(kw, (fan_in, fan_out), jnp.float32, -bound, bound)
        b = jax.random.uniform(kb, (1, fan_out), jnp.float32, -bound, bound)
        return w, b

    w_in, b_in = linear(ks[0], ks[1], n_in, n_nodes)

    w_h_list, b_h_list = [], []
    for i in range(n_layers - 1):
        w, b = linear(ks[2 + 2 * i], ks[3 + 2 * i], n_nodes, n_nodes)
        w_h_list.append(w)
        b_h_list.append(b[None])  # (1, 1, nNodes)
    if n_layers - 1 > 0:
        w_h = jnp.stack(w_h_list, axis=0)        # (L-1, nNodes, nNodes)
        b_h = jnp.concatenate(b_h_list, axis=0)  # (L-1, 1, nNodes)
    else:
        w_h = jnp.zeros((0, n_nodes, n_nodes), jnp.float32)
        b_h = jnp.zeros((0, 1, n_nodes), jnp.float32)

    w_out, b_out = linear(ks[2 * n_layers], ks[2 * n_layers + 1], n_nodes, n_out)
    return w_in, b_in, w_h, b_h, w_out, b_out


def prepare_params(w_in, b_in, w_h, b_h, w_out, b_out,
                   *, param_dtype=jnp.bfloat16):
    """One-time prep (hoisted out of the jitted forward): cast weights to the
    MXU-native dtype; keep biases f32 (added to the f32 accumulator)."""
    return (w_in.astype(param_dtype), b_in.astype(jnp.float32),
            w_h.astype(param_dtype), b_h.astype(jnp.float32),
            w_out.astype(param_dtype), b_out.astype(jnp.float32))


def reference_forward(x, w_in, b_in, w_h, b_h, w_out, b_out):
    """Pure-JAX reference with the same precision policy as the kernel
    (bf16 matmul inputs, f32 accumulation, exact SiLU)."""
    cdt = w_in.dtype
    h = jnp.dot(x.astype(cdt), w_in, preferred_element_type=jnp.float32) + b_in
    h = h * jax.nn.sigmoid(h)
    for i in range(w_h.shape[0]):
        h = jnp.dot(h.astype(cdt), w_h[i],
                    preferred_element_type=jnp.float32) + b_h[i]
        h = h * jax.nn.sigmoid(h)
    return jnp.dot(h.astype(cdt), w_out,
                   preferred_element_type=jnp.float32) + b_out


if __name__ == "__main__":
    # ANN(n_in=8, n_out=4, nNodes=32, nLayers=3, activation='silu',
    #     out_activation=None), batch=2.
    # TODO(synk): out_activation is None in the spec; per-output activations
    # (the out_activation list branch) are not implemented here.
    B, n_in, n_out, n_nodes, n_layers = 2, 8, 4, 32, 3

    key = jax.random.PRNGKey(0)
    k_x, k_p, k_x2, k_p2 = jax.random.split(key, 4)

    x = jax.random.normal(k_x, (B, n_in), dtype=jnp.float32)
    params = prepare_params(*init_params(k_p, n_in, n_out, n_nodes, n_layers))

    y = jax.block_until_ready(ann_forward(x, *params))
    y_ref = reference_forward(x, *params)
    assert y.shape == (B, n_out)
    assert jnp.allclose(y, y_ref, atol=1e-2, rtol=1e-2), (
        float(jnp.max(jnp.abs(y - y_ref))))

    # Also exercise the streamed-hidden-weights path (auto-selected when the
    # resident weight stack would overflow VMEM; forced here for coverage).
    B2, n_in2, n_out2, n_nodes2, n_layers2 = 64, 16, 8, 128, 4
    x2 = jax.random.normal(k_x2, (B2, n_in2), dtype=jnp.float32)
    params2 = prepare_params(
        *init_params(k_p2, n_in2, n_out2, n_nodes2, n_layers2))
    y2 = jax.block_until_ready(ann_forward(x2, *params2, stream_hidden=True))
    y2_ref = reference_forward(x2, *params2)
    assert y2.shape == (B2, n_out2)
    assert jnp.allclose(y2, y2_ref, atol=1e-2, rtol=1e-2), (
        float(jnp.max(jnp.abs(y2 - y2_ref))))

    print("KERNEL_OK")
</pallas_src>

<mosaic_0001>
module attributes {stable_mosaic.version = 11 : i64} {
  func.func @mlp_resident_kernel(%arg0: i32, %arg1: memref<8x8xf32, #tpu.memory_space<vmem>>, %arg2: memref<8x32xbf16, #tpu.memory_space<vmem>>, %arg3: memref<1x32xf32, #tpu.memory_space<vmem>>, %arg4: memref<2x32x32xbf16, #tpu.memory_space<vmem>>, %arg5: memref<2x1x32xf32, #tpu.memory_space<vmem>>, %arg6: memref<32x4xbf16, #tpu.memory_space<vmem>>, %arg7: memref<1x4xf32, #tpu.memory_space<vmem>>, %arg8: memref<8x4xf32, #tpu.memory_space<vmem>>) attributes {dimension_semantics = [#tpu.dimension_semantics<parallel>], iteration_bounds = array<i64: 1>, scalar_prefetch = 0 : i64, scratch_operands = 0 : i64, tpu.core_type = #tpu.core_type<tc>, window_params = [{transform_indices = @transform_0, window_bounds = array<i64: 8, 8>}, {pipeline_mode = #tpu.pipeline_mode<synchronous>, transform_indices = @transform_1, window_bounds = array<i64: 8, 32>}, {pipeline_mode = #tpu.pipeline_mode<synchronous>, transform_indices = @transform_2, window_bounds = array<i64: 1, 32>}, {pipeline_mode = #tpu.pipeline_mode<synchronous>, transform_indices = @transform_3, window_bounds = array<i64: 2, 32, 32>}, {pipeline_mode = #tpu.pipeline_mode<synchronous>, transform_indices = @transform_4, window_bounds = array<i64: 2, 1, 32>}, {pipeline_mode = #tpu.pipeline_mode<synchronous>, transform_indices = @transform_5, window_bounds = array<i64: 32, 4>}, {pipeline_mode = #tpu.pipeline_mode<synchronous>, transform_indices = @transform_6, window_bounds = array<i64: 1, 4>}, {transform_indices = @transform_7, window_bounds = array<i64: 8, 4>}]} {
    %c0 = arith.constant 0 : index
    %c0_0 = arith.constant 0 : index
    %0 = vector.load %arg1[%c0, %c0_0] : memref<8x8xf32, #tpu.memory_space<vmem>>, vector<8x8xf32>
    %1 = arith.truncf %0 : vector<8x8xf32> to vector<8x8xbf16>
    %c0_1 = arith.constant 0 : index
    %c0_2 = arith.constant 0 : index
    %2 = vector.load %arg2[%c0_1, %c0_2] : memref<8x32xbf16, #tpu.memory_space<vmem>>, vector<8x32xbf16>
    %cst = arith.constant dense<0.000000e+00> : vector<8x32xf32>
    %3 = tpu.matmul %1, %2, %cst {dimension_numbers = #tpu.dot_dimension_numbers<[1], [0], [0], [1], [0, 0, 1, 1], [], []>} : vector<8x8xbf16>, vector<8x32xbf16>, vector<8x32xf32> -> vector<8x32xf32>
    %c0_3 = arith.constant 0 : index
    %c0_4 = arith.constant 0 : index
    %4 = vector.load %arg3[%c0_3, %c0_4] : memref<1x32xf32, #tpu.memory_space<vmem>>, vector<1x32xf32>
    %5 = vector.broadcast %4 : vector<1x32xf32> to vector<8x32xf32>
    %6 = arith.addf %3, %5 : vector<8x32xf32>
    %7 = arith.negf %6 : vector<8x32xf32>
    %8 = math.exp %7 : vector<8x32xf32>
    %cst_5 = arith.constant 1.000000e+00 : f32
    %9 = vector.broadcast %cst_5 : f32 to vector<8x32xf32>
    %10 = arith.addf %9, %8 : vector<8x32xf32>
    %11 = arith.divf %9, %10 : vector<8x32xf32>
    %12 = arith.mulf %6, %11 : vector<8x32xf32>
    %13 = arith.truncf %12 : vector<8x32xf32> to vector<8x32xbf16>
    %c0_6 = arith.constant 0 : index
    %c0_7 = arith.constant 0 : index
    %c0_8 = arith.constant 0 : index
    %14 = vector.load %arg4[%c0_6, %c0_7, %c0_8] : memref<2x32x32xbf16, #tpu.memory_space<vmem>>, vector<1x32x32xbf16>
    %15 = vector.shape_cast %14 : vector<1x32x32xbf16> to vector<32x32xbf16>
    %cst_9 = arith.constant dense<0.000000e+00> : vector<8x32xf32>
    %16 = tpu.matmul %13, %15, %cst_9 {dimension_numbers = #tpu.dot_dimension_numbers<[1], [0], [0], [1], [0, 0, 1, 1], [], []>} : vector<8x32xbf16>, vector<32x32xbf16>, vector<8x32xf32> -> vector<8x32xf32>
    %c0_10 = arith.constant 0 : index
    %c0_11 = arith.constant 0 : index
    %c0_12 = arith.constant 0 : index
    %17 = vector.load %arg5[%c0_10, %c0_11, %c0_12] : memref<2x1x32xf32, #tpu.memory_space<vmem>>, vector<1x1x32xf32>
    %18 = vector.shape_cast %17 : vector<1x1x32xf32> to vector<1x32xf32>
    %19 = vector.broadcast %18 : vector<1x32xf32> to vector<8x32xf32>
    %20 = arith.addf %16, %19 : vector<8x32xf32>
    %21 = arith.negf %20 : vector<8x32xf32>
    %22 = math.exp %21 : vector<8x32xf32>
    %cst_13 = arith.constant 1.000000e+00 : f32
    %23 = vector.broadcast %cst_13 : f32 to vector<8x32xf32>
    %24 = arith.addf %23, %22 : vector<8x32xf32>
    %25 = arith.divf %23, %24 : vector<8x32xf32>
    %26 = arith.mulf %20, %25 : vector<8x32xf32>
    %27 = arith.truncf %26 : vector<8x32xf32> to vector<8x32xbf16>
    %c1 = arith.constant 1 : index
    %c0_14 = arith.constant 0 : index
    %c0_15 = arith.constant 0 : index
    %28 = vector.load %arg4[%c1, %c0_14, %c0_15] : memref<2x32x32xbf16, #tpu.memory_space<vmem>>, vector<1x32x32xbf16>
    %29 = vector.shape_cast %28 : vector<1x32x32xbf16> to vector<32x32xbf16>
    %cst_16 = arith.constant dense<0.000000e+00> : vector<8x32xf32>
    %30 = tpu.matmul %27, %29, %cst_16 {dimension_numbers = #tpu.dot_dimension_numbers<[1], [0], [0], [1], [0, 0, 1, 1], [], []>} : vector<8x32xbf16>, vector<32x32xbf16>, vector<8x32xf32> -> vector<8x32xf32>
    %c1_17 = arith.constant 1 : index
    %c0_18 = arith.constant 0 : index
    %c0_19 = arith.constant 0 : index
    %31 = vector.load %arg5[%c1_17, %c0_18, %c0_19] : memref<2x1x32xf32, #tpu.memory_space<vmem>>, vector<1x1x32xf32>
    %32 = vector.shape_cast %31 : vector<1x1x32xf32> to vector<1x32xf32>
    %33 = vector.broadcast %32 : vector<1x32xf32> to vector<8x32xf32>
    %34 = arith.addf %30, %33 : vector<8x32xf32>
    %35 = arith.negf %34 : vector<8x32xf32>
    %36 = math.exp %35 : vector<8x32xf32>
    %cst_20 = arith.constant 1.000000e+00 : f32
    %37 = vector.broadcast %cst_20 : f32 to vector<8x32xf32>
    %38 = arith.addf %37, %36 : vector<8x32xf32>
    %39 = arith.divf %37, %38 : vector<8x32xf32>
    %40 = arith.mulf %34, %39 : vector<8x32xf32>
    %41 = arith.truncf %40 : vector<8x32xf32> to vector<8x32xbf16>
    %c0_21 = arith.constant 0 : index
    %c0_22 = arith.constant 0 : index
    %42 = vector.load %arg6[%c0_21, %c0_22] : memref<32x4xbf16, #tpu.memory_space<vmem>>, vector<32x4xbf16>
    %cst_23 = arith.constant dense<0.000000e+00> : vector<8x4xf32>
    %43 = tpu.matmul %41, %42, %cst_23 {dimension_numbers = #tpu.dot_dimension_numbers<[1], [0], [0], [1], [0, 0, 1, 1], [], []>} : vector<8x32xbf16>, vector<32x4xbf16>, vector<8x4xf32> -> vector<8x4xf32>
    %c0_24 = arith.constant 0 : index
    %c0_25 = arith.constant 0 : index
    %44 = vector.load %arg7[%c0_24, %c0_25] : memref<1x4xf32, #tpu.memory_space<vmem>>, vector<1x4xf32>
    %45 = vector.broadcast %44 : vector<1x4xf32> to vector<8x4xf32>
    %46 = arith.addf %43, %45 : vector<8x4xf32>
    %c0_26 = arith.constant 0 : index
    %c0_27 = arith.constant 0 : index
    %47 = vector.load %arg8[%c0_26, %c0_27] : memref<8x4xf32, #tpu.memory_space<vmem>>, vector<8x4xf32>
    tpu.vector_store %arg8[%c0_26, %c0_27], %46 {strides = array<i32>} : memref<8x4xf32, #tpu.memory_space<vmem>>, vector<8x4xf32>,
    return
  }
  func.func @transform_0(%arg0: i32) -> (i32, i32) {
    %c0_i32 = arith.constant 0 : i32
    %c0_i32_0 = arith.constant 0 : i32
    return %arg0, %c0_i32 : i32, i32
  }
  func.func @transform_1(%arg0: i32) -> (i32, i32) {
    %c0_i32 = arith.constant 0 : i32
    %c0_i32_0 = arith.constant 0 : i32
    %c0_i32_1 = arith.constant 0 : i32
    return %c0_i32, %c0_i32_0 : i32, i32
  }
  func.func @transform_2(%arg0: i32) -> (i32, i32) {
    %c0_i32 = arith.constant 0 : i32
    %c0_i32_0 = arith.constant 0 : i32
    %c0_i32_1 = arith.constant 0 : i32
    return %c0_i32, %c0_i32_0 : i32, i32
  }
  func.func @transform_3(%arg0: i32) -> (i32, i32, i32) {
    %c0_i32 = arith.constant 0 : i32
    %c0_i32_0 = arith.constant 0 : i32
    %c0_i32_1 = arith.constant 0 : i32
    %c0_i32_2 = arith.constant 0 : i32
    return %c0_i32, %c0_i32_0, %c0_i32_1 : i32, i32, i32
  }
  func.func @transform_4(%arg0: i32) -> (i32, i32, i32) {
    %c0_i32 = arith.constant 0 : i32
    %c0_i32_0 = arith.constant 0 : i32
    %c0_i32_1 = arith.constant 0 : i32
    %c0_i32_2 = arith.constant 0 : i32
    return %c0_i32, %c0_i32_0, %c0_i32_1 : i32, i32, i32
  }
  func.func @transform_5(%arg0: i32) -> (i32, i32) {
    %c0_i32 = arith.constant 0 : i32
    %c0_i32_0 = arith.constant 0 : i32
    %c0_i32_1 = arith.constant 0 : i32
    return %c0_i32, %c0_i32_0 : i32, i32
  }
  func.func @transform_6(%arg0: i32) -> (i32, i32) {
    %c0_i32 = arith.constant 0 : i32
    %c0_i32_0 = arith.constant 0 : i32
    %c0_i32_1 = arith.constant 0 : i32
    return %c0_i32, %c0_i32_0 : i32, i32
  }
  func.func @transform_7(%arg0: i32) -> (i32, i32) {
    %c0_i32 = arith.constant 0 : i32
    %c0_i32_0 = arith.constant 0 : i32
    return %arg0, %c0_i32 : i32, i32
  }
}

</mosaic_0001>

<bundles_post_ra>
// kernel: ann_forward.1
= control target key start
LH: loop header
LB: loop body
LE: loop exit
PB: predicated region body
PF: predicated region fallthrough
CT: control target
= control target key end

     0   :  { %12 = vsyncpa [#allocation3], 0  ;;  %s561_s0 = inlined_call_operand.vmem [shape: f32[8,8], index: 0, kind: input, shape index: {}]   ;;  %s562_s1 = inlined_call_operand.hbm [shape: bf16[8,32], index: 1, kind: input, shape index: {}]   ;;  %s563_s2 = inlined_call_operand.hbm [shape: f32[1,32], index: 2, kind: input, shape index: {}]   ;;  %s564_s3 = inlined_call_operand.vmem [shape: bf16[2,32,32], index: 3, kind: input, shape index: {}]   ;;  %s565_s4 = inlined_call_operand.vmem [shape: f32[2,1,32], index: 4, kind: input, shape index: {}]   ;;  %s566_s5 = inlined_call_operand.vmem [shape: bf16[32,4], index: 5, kind: input, shape index: {}]   ;;  %s567_s6 = inlined_call_operand.vmem [shape: f32[1,4], index: 6, kind: input, shape index: {}]   ;;  %s568_s7 = inlined_call_operand.vmem [shape: f32[8,4], index: 7, kind: output, shape index: {}]  }
   0x1   :  { %13 = vsyncpa [#allocation5], 0  ;;  %s471_s24 = smov [#allocation2]   ;;  %s472_s26 = smov [#allocation4]  }
   0x2   :  { %s22_s25 = sshll.u32 %s471_s24, 4  ;;  %s32_s27 = sshll.u32 %s472_s26, 4  ;;  %s23_s25 = int_to_ptr.vmem [resolvable:$true] %s22_s25  ;;  %s33_s27 = int_to_ptr.vmem [resolvable:$true] %s32_s27 }
   0x3   :  { %s435_s28 = scalar_lea.vmem %s23_s25, 64  ;;  %p440_p1 = scmp.lt.s32.totalorder %s23_s25, %s23_s25 }
   0x4   :  { %p436_p0 = scmp.ne.s32.totalorder %s23_s25, %s435_s28  ;;  %p441_p2 = scmp.lt.s32.totalorder %s435_s28, %s435_s28 }
   0x6   :  { %p442_p3 = por %p441_p2, %p440_p1 }
   0x8   :  { %p443_p4 = pnand %p442_p3, %p436_p0 }
   0xa   :  { %446 = shalt.err (!%p443_p4)
}
   0xb   :  { %25 = dma.hbm_to_vmem [thread:$0]  %s562_s1, 64, %s23_s25, [#allocation3]  }
   0xc   :  { %s455_s8 = scalar_lea.vmem %s33_s27, 16  ;;  %s459_s9 = scalar_lea.vmem %s33_s27, 32 }
   0xd   :  { %p456_p5 = scmp.ne.s32.totalorder %s33_s27, %s455_s8  ;;  %p460_p6 = scmp.lt.s32.totalorder %s33_s27, %s33_s27 }
   0xe   :  { %p461_p7 = scmp.lt.s32.totalorder %s459_s9, %s455_s8 }
  0x10   :  { %p462_p8 = por %p461_p7, %p460_p6 }
  0x12   :  { %p463_p9 = pnand %p462_p8, %p456_p5 }
  0x14   :  { %466 = shalt.err (!%p463_p9)
}
  0x15   :  { %35 = dma.hbm_to_vmem [thread:$0]  %s563_s2, 16, %s33_s27, [#allocation5]  }
  0x16   :  { %467 = dma.done.wait [#allocation3], 64  }
  0x17   :  { %468 = vsyncadd [#allocation3], 4294967232 }
  0x18   :  { %469 = dma.done.wait [#allocation5], 16  }
  0x19   :  { %470 = vsyncadd [#allocation5], 4294967280  ;;  %v473_v0 = vmov 0.0   ;;  %vm474_vm0 = vmmov 0   ;;  %vm65_vm1 = vcmask 1043456   ;;  %v51_v2 = vld [vmem:[%s561_s0] sm:$0xff] }
  0x1a   :  { %375 = vmatprep.subr.bf16.mxu0 %v473_v0  ;;  %377 = vmatprep.mubr.msk.bf16.mxu0 %vm474_vm0, %v473_v0  ;;  %v53_v1 = vld [vmem:[#allocation2] sm:$0xf]  ;;  %v52_v4 = vpack.c.bf16 %v51_v2, %v51_v2  ;;  %vm61_vm2 = vcmask 64512   ;;  %v409_v5 = vld [vmem:[%s564_s3 + $0x8] sm:$0xff]   ;;  %v342_v7 = vld [vmem:[#allocation4] ss:$0 sm:$0xff] }
  0x1b   :  { %381 = vmatprep.subr.bf16.mxu1 %v473_v0  ;;  %385 = vmatprep.mubr.msk.bf16.mxu1 %vm474_vm0, %v473_v0  ;;  %v67_v3 = vsel %vm65_vm1, %v53_v1, 0  ;;  %v410_v6 = vld [vmem:[%s564_s3] sm:$0xff]   ;;  %vm140_vm3 = vcmask 261120   ;;  %v411_v19 = vld [vmem:[%s564_s3 + $0x18] sm:$0xff]   ;;  %v412_v20 = vld [vmem:[%s564_s3 + $0x10] sm:$0xff]   ;;  %vm334_vm4 = vcmask 31744  }
  0x1c   :  { %376 = vmatpush3.bf16.msra.mxu0 %v67_v3  ;;  %382 = vmatpush3.bf16.msra.mxu1 %v409_v5  ;;  %v345_v21 = vld [vmem:[%s565_s4] ss:$0 sm:$0xff]  ;;  %v413_v33 = vld [vmem:[%s566_s5 + $0x8] sm:$0xff]   ;;  %v355_v35 = vld [vmem:[%s565_s4 + $0x1] ss:$0 sm:$0xff] }
  0x1d   :  { %389 = vmatprep.subr.bf16.mxu0 %v473_v0  ;;  %383 = vmatprep.subr.bf16.mxu1 %v473_v0  ;;  %v414_v34 = vld [vmem:[%s566_s5] sm:$0xff]  }
  0x1e   :  { %v360_v47 = vld [vmem:[%s567_s6] ss:$0 sm:$0xff] }
  0x1f   :  { %378 = vmatmul.mubr.msk.bf16.vlgmr.msra.gmra.mxu0 %vm61_vm2, %v52_v4 }
  0x20   :  { %393 = vmatprep.mubr.msk.bf16.mxu0 %vm474_vm0, %v473_v0  ;;  %384 = vmatpush3.bf16.msra.mxu1 %v410_v6 }
  0x21   :  { %397 = vmatprep.subr.bf16.mxu1 %v473_v0  ;;  %390 = vmatpush3.bf16.msra.mxu0 %v411_v19 }
  0x22   :  { %391 = vmatprep.subr.bf16.mxu0 %v473_v0 }
  0x25   :  { %392 = vmatpush3.bf16.msra.mxu0 %v412_v20 }
  0xdf   :  { %v103_v8 = vpop.f32.mrf.mxu0 }
  0xe0   :  { %v104_v9 = vadd.f32 %v342_v7, %v103_v8 }
  0xe1   :  { %v379_v10 = vpop.f32.mrf.mxu0 }
  0xe2   :  { %v344_v11 = vmul.f32 -1.442695, %v104_v9 }
  0xe3   :  { %v106_v12 = vpop.f32.mrf.mxu0 }
  0xe4   :  { %415 = vpow2.f32 %v344_v11 }
  0xe5   :  { %v380_v13 = vpop.f32.mrf.mxu0 }
  0xf1   :  { %v416_v14 = vpop.eup %415 }
  0xf2   :  { %v112_v15 = vadd.f32 1.0, %v416_v14 }
  0xf4   :  { %417 = vrcp.f32 %v112_v15 }
 0x101   :  { %v418_v16 = vpop.eup %417 }
 0x102   :  { %v115_v17 = vmul.f32 %v418_v16, %v104_v9 }
 0x104   :  { %v116_v18 = vpack.c.bf16 %v115_v17, %v115_v17 }
 0x106   :  { %386 = vmatmul.mubr.msk.bf16.vlgmr.msra.gmra.mxu1 %vm140_vm3, %v116_v18 }
 0x107   :  { %401 = vmatprep.mubr.msk.bf16.mxu1 %vm474_vm0, %v473_v0  ;;  %398 = vmatpush3.bf16.msra.mxu1 %v413_v33 }
 0x108   :  { %399 = vmatprep.subr.bf16.mxu1 %v473_v0 }
 0x10b   :  { %400 = vmatpush3.bf16.msra.mxu1 %v414_v34 }
 0x1c6   :  { %v178_v22 = vpop.f32.mrf.mxu1 }
 0x1c7   :  { %v179_v23 = vadd.f32 %v345_v21, %v178_v22 }
 0x1c8   :  { %v387_v24 = vpop.f32.mrf.mxu1 }
 0x1c9   :  { %v349_v25 = vmul.f32 -1.442695, %v179_v23 }
 0x1ca   :  { %v181_v26 = vpop.f32.mrf.mxu1 }
 0x1cb   :  { %419 = vpow2.f32 %v349_v25 }
 0x1cc   :  { %v388_v27 = vpop.f32.mrf.mxu1 }
 0x1d8   :  { %v420_v28 = vpop.eup %419 }
 0x1d9   :  { %v187_v29 = vadd.f32 1.0, %v420_v28 }
 0x1db   :  { %421 = vrcp.f32 %v187_v29 }
 0x1e8   :  { %v422_v30 = vpop.eup %421 }
 0x1e9   :  { %v190_v31 = vmul.f32 %v422_v30, %v179_v23 }
 0x1eb   :  { %v191_v32 = vpack.c.bf16 %v190_v31, %v190_v31 }
 0x1ed   :  { %394 = vmatmul.mubr.msk.bf16.vlgmr.msra.gmra.mxu0 %vm140_vm3, %v191_v32 }
 0x2ad   :  { %v254_v36 = vpop.f32.mrf.mxu0 }
 0x2ae   :  { %v255_v37 = vadd.f32 %v355_v35, %v254_v36 }
 0x2af   :  { %v395_v38 = vpop.f32.mrf.mxu0 }
 0x2b0   :  { %v359_v39 = vmul.f32 -1.442695, %v255_v37 }
 0x2b1   :  { %v257_v40 = vpop.f32.mrf.mxu0 }
 0x2b2   :  { %423 = vpow2.f32 %v359_v39 }
 0x2b3   :  { %v396_v41 = vpop.f32.mrf.mxu0 }
 0x2bf   :  { %v424_v42 = vpop.eup %423 }
 0x2c0   :  { %v263_v43 = vadd.f32 1.0, %v424_v42 }
 0x2c2   :  { %425 = vrcp.f32 %v263_v43 }
 0x2cf   :  { %v426_v44 = vpop.eup %425 }
 0x2d0   :  { %v266_v45 = vmul.f32 %v426_v44, %v255_v37 }
 0x2d2   :  { %v267_v46 = vpack.c.bf16 %v266_v45, %v266_v45 }
 0x2d4   :  { %402 = vmatmul.mubr.msk.bf16.vlgmr.msra.gmra.mxu1 %vm140_vm3, %v267_v46 }
 0x394   :  { %v328_v48 = vpop.f32.mrf.mxu1 }
 0x395   :  { %v329_v49 = vadd.f32 %v360_v47, %v328_v48 }
 0x396   :  { %v403_v50 = vpop.f32.mrf.mxu1 }
 0x397   :  { %335 = vst.msk [vmem:[%s568_s7] sm:$0xff] %vm334_vm4, %v329_v49 }
 0x398   :  { %v331_v51 = vpop.f32.mrf.mxu1 }
 0x39a   :  { %v404_v52 = vpop.f32.mrf.mxu1 }
 0x39b   :  { %340 = vsyncpa [#allocation3], 1 }
 0x39c   :  { %341 = vsyncpa [#allocation5], 1 }

</bundles_post_ra>
